<compile_context>
chip_gen: v6e
topology: v6e:2x2x1
jax: 0.10.0
libtpu: 0.0.40
codegen_flags: <defaults>
</compile_context>

<pallas_src>
import functools

import jax
import jax.numpy as jnp
from jax.experimental import pallas as pl
from jax.experimental.pallas import tpu as pltpu


def _round_up(n, m):
    return ((n + m - 1) // m) * m


def _default_tile_cap():
    """Per-chip batch-tile cap: 256 on 64 MiB/TC parts (v7x), 512 on 128 MiB parts."""
    try:
        vmem = pltpu.get_tpu_info().vmem_capacity_bytes
        return 256 if vmem <= (64 << 20) else 512
    except Exception:
        return 256


def _pick_tile_b(bs, cap=None):
    """Largest sublane-aligned batch tile <= cap that divides bs.

    Falls back to the full batch (block == full dim is always legal); for large
    batches splits once more so the 'parallel' axis has >= 2 grid steps to
    distribute across v7x's two TensorCores.
    """
    if cap is None:
        cap = _default_tile_cap()
    if bs <= cap:
        tile = bs
    else:
        tile = bs  # fallback: one full-batch block (correct, just bigger VMEM)
        for d in range(min(cap, bs), 0, -1):
            if bs % d == 0 and d % 8 == 0:
                tile = d
                break
    if tile == bs and bs > 128 and bs % 16 == 0:
        tile = bs // 2  # >= 2 grid steps for dual-TC parts; bs%16==0 keeps 8-row alignment
    return tile


def _noise_map_kernel(kd, out_dim, xnp_ref, w1_ref, b1_ref, w2_ref, b2_ref,
                      w3_ref, b3_ref, slab_ref):
    """One batch tile: out = L3(relu(L2(relu(L1([x|noise|pr1]))))),  l12 = ||out - pr1||_2."""
    xnp = xnp_ref[...]                 # (tb, kd + out_dim), f32 row stream
    cdt = w1_ref.dtype                 # MXU compute dtype (bf16 in production, f32 for checks)

    # Layer 1: the pr1 rows of W1 are exact zeros, so feeding the full stream is a no-op
    # for those lanes — one MXU push, no in-kernel concat / lane shuffle.
    h = jnp.dot(xnp.astype(cdt), w1_ref[...],
                preferred_element_type=jnp.float32) + b1_ref[...]
    h = jnp.maximum(h, 0.0)
    h = jnp.dot(h.astype(cdt), w2_ref[...],
                preferred_element_type=jnp.float32) + b2_ref[...]
    h = jnp.maximum(h, 0.0)
    out = jnp.dot(h.astype(cdt), w3_ref[...],
                  preferred_element_type=jnp.float32) + b3_ref[...]
    # out: (tb, out_p); columns >= out_dim are exact zeros (zero-padded W3/b3).

    # Sample-dependent half of the energy distance, in f32 (pr1 rides the f32 row stream).
    pr1 = xnp[:, kd:kd + out_dim]
    d = out[:, :out_dim] - pr1
    l12 = jnp.sqrt(jnp.sum(d * d, axis=-1, keepdims=True))      # (tb, 1), f32

    # Fuse l12 into lane `out_dim` of the padded output slab -> one lane-dense full store.
    col = jax.lax.broadcasted_iota(jnp.int32, out.shape, 1)
    slab_ref[...] = jnp.where(col == out_dim, l12, out).astype(slab_ref.dtype)


def prepare_params(params, inp_dim, noise_dim, *, use_bf16=True):
    """Stack W1 with zero rows for the pr1 lanes and zero-pad hidden/output dims to 128 lanes.

    Padding is exact-zero (padded hidden units are relu(0)=0 feeding zero weight rows),
    so the numerical result is unchanged.  Weights go to bf16 for the MXU (halves VMEM
    and weight DMA); biases stay f32 (added to the f32 accumulator).
    """
    w1, b1, w2, b2, w3, b3 = params
    kd, h1 = w1.shape
    assert kd == inp_dim + noise_dim
    h2 = w2.shape[1]
    out_dim = w3.shape[1]
    h1p = _round_up(h1, 128)
    h2p = _round_up(h2, 128)
    out_p = _round_up(out_dim + 1, 128)        # +1 lane reserved for the fused l12 column
    wdt = jnp.bfloat16 if use_bf16 else jnp.float32

    w1s = jnp.zeros((kd + out_dim, h1p), wdt).at[:kd, :h1].set(w1.astype(wdt))
    b1p = jnp.zeros((1, h1p), jnp.float32).at[:, :h1].set(b1)
    w2p = jnp.zeros((h1p, h2p), wdt).at[:h1, :h2].set(w2.astype(wdt))
    b2p = jnp.zeros((1, h2p), jnp.float32).at[:, :h2].set(b2)
    w3p = jnp.zeros((h2p, out_p), wdt).at[:h2, :out_dim].set(w3.astype(wdt))
    b3p = jnp.zeros((1, out_p), jnp.float32).at[:, :out_dim].set(b3)
    return (w1s, b1p, w2p, b2p, w3p, b3p)


def noise_input_map_forward(x, noise, prepped, pr1, pr2, *, tile_b=None):
    """Fused Pallas forward. Returns (out, ed): out (bs, out_dim), ed (bs,)."""
    w1, b1, w2, b2, w3, b3 = prepped
    bs, inp_dim = x.shape
    noise_dim = noise.shape[1]
    out_dim = pr1.shape[1]
    kd = inp_dim + noise_dim
    h1p, h2p, out_p = w1.shape[1], w2.shape[1], w3.shape[1]

    # One lane-packed f32 row stream [x | noise | pr1] (single cheap XLA concat).
    xnp = jnp.concatenate(
        [x.astype(jnp.float32), noise.astype(jnp.float32), pr1.astype(jnp.float32)],
        axis=-1)

    if tile_b is None:
        tile_b = _pick_tile_b(bs)
    assert bs % tile_b == 0, "batch must be divisible by tile_b"
    grid = (bs // tile_b,)

    # Explicit scoped-VMEM budget: single-buffered resident weights + double-buffered
    # row streams + f32 activation headroom.  Floor 32 MiB; cap 64 MiB (v7x per-TC).
    nbytes = lambda a: a.size * jnp.dtype(a.dtype).itemsize
    weight_bytes = sum(nbytes(a) for a in prepped)
    row_bytes = 2 * 4 * tile_b * (kd + out_dim + out_p)
    act_bytes = 4 * 4 * tile_b * (h1p + h2p + out_p)
    vmem_limit = int(min(max(weight_bytes + row_bytes + act_bytes + (4 << 20), 32 << 20),
                         64 << 20))
    # TODO(synk): on v5e/v6e (128 MiB VMEM) this cap could be raised toward ~100 MiB if
    # very large hidden dims ever need it; at that point W2/W3 should be streamed instead.

    flops = 2 * bs * ((kd + out_dim) * h1p + h1p * h2p + h2p * out_p)
    bytes_accessed = int(nbytes(xnp) + weight_bytes + 4 * bs * out_p)
    cost = pl.CostEstimate(flops=int(flops), transcendentals=int(bs),
                           bytes_accessed=bytes_accessed)

    row_in = pl.BlockSpec((tile_b, kd + out_dim), lambda i: (i, 0))
    row_out = pl.BlockSpec((tile_b, out_p), lambda i: (i, 0))

    def run(single_buffer_weights):
        if single_buffer_weights:
            resident = lambda a: pl.BlockSpec(a.shape, lambda i: (0, 0),
                                              pipeline_mode=pl.Buffered(1))
        else:
            resident = lambda a: pl.BlockSpec(a.shape, lambda i: (0, 0))
        return pl.pallas_call(
            functools.partial(_noise_map_kernel, kd, out_dim),
            grid=grid,
            out_shape=jax.ShapeDtypeStruct((bs, out_p), jnp.float32),
            in_specs=[row_in, resident(w1), resident(b1), resident(w2),
                      resident(b2), resident(w3), resident(b3)],
            out_specs=row_out,
            compiler_params=pltpu.CompilerParams(
                dimension_semantics=("parallel",),
                vmem_limit_bytes=vmem_limit),
            cost_estimate=cost,
        )(xnp, w1, b1, w2, b2, w3, b3)

    try:
        slab = run(True)        # single-buffered resident weights (halves weight VMEM)
    except Exception:
        slab = run(False)       # fallback if this JAX build rejects Buffered(1)

    out = slab[:, :out_dim]
    l12 = slab[:, out_dim]
    # Output-independent energy-distance term, hoisted out of the kernel.
    l11 = jnp.linalg.norm(pr1 - pr2, axis=1)
    ed = 2.0 * l12 - l11
    return out, ed


def init_params(key, inp_dim, noise_dim, hidden_dims, out_dim):
    """Deterministic MLP params, weights as (in, out); biases as (1, out)."""
    dims = [inp_dim + noise_dim] + list(hidden_dims) + [out_dim]
    params = []
    for d_in, d_out in zip(dims[:-1], dims[1:]):
        key, kw, kb = jax.random.split(key, 3)
        bound = 1.0 / (d_in ** 0.5)  # mimic torch.nn.Linear default init
        w = jax.random.uniform(kw, (d_in, d_out), jnp.float32, -bound, bound)
        b = jax.random.uniform(kb, (1, d_out), jnp.float32, -bound, bound)
        params += [w, b]
    return tuple(params)


def reference_forward(x, noise, params, pr1, pr2):
    w1, b1, w2, b2, w3, b3 = params
    hp = jax.lax.Precision.HIGHEST
    h = jnp.maximum(jnp.dot(jnp.concatenate([x, noise], -1), w1, precision=hp) + b1, 0.0)
    h = jnp.maximum(jnp.dot(h, w2, precision=hp) + b2, 0.0)
    out = jnp.dot(h, w3, precision=hp) + b3
    l12 = jnp.linalg.norm(out - pr1, axis=1)
    l11 = jnp.linalg.norm(pr1 - pr2, axis=1)
    return out, 2.0 * l12 - l11


if __name__ == "__main__":
    # Small shapes consistent with the module.
    bs, inp_dim, out_dim = 8, 16, 16
    noise_dim = inp_dim                  # noise_dim defaults to inp_dim
    hidden_dims = [32, 32]

    key = jax.random.PRNGKey(0)
    kx, kn, kp, kpr = jax.random.split(key, 4)

    x = jax.random.normal(kx, (bs, inp_dim), jnp.float32)
    noise = jax.random.normal(kn, (bs, noise_dim), jnp.float32)       # torch.randn(bs, noise_dim)
    params = init_params(kp, inp_dim, noise_dim, hidden_dims, out_dim)
    # prior = standard Normal over R^out_dim; prior.sample((2, bs)) -> two (bs, out_dim) draws
    prior_samples = jax.random.normal(kpr, (2, bs, out_dim), jnp.float32)
    pr1, pr2 = prior_samples[0], prior_samples[1]

    ref_out, ref_ed = reference_forward(x, noise, params, pr1, pr2)

    # 1) f32 path: tight correctness check of the kernel structure.
    prepped_f32 = prepare_params(params, inp_dim, noise_dim, use_bf16=False)
    out32, ed32 = noise_input_map_forward(x, noise, prepped_f32, pr1, pr2)
    jax.block_until_ready((out32, ed32))
    assert out32.shape == (bs, out_dim) and ed32.shape == (bs,)
    assert jnp.allclose(out32, ref_out, atol=1e-3, rtol=1e-3)
    assert jnp.allclose(ed32, ref_ed, atol=1e-3, rtol=1e-3)

    # 2) bf16 path (production default: bf16 MXU operands, f32 accumulation + f32 norm).
    prepped_bf16 = prepare_params(params, inp_dim, noise_dim, use_bf16=True)
    out16, ed16 = noise_input_map_forward(x, noise, prepped_bf16, pr1, pr2)
    jax.block_until_ready((out16, ed16))
    assert out16.shape == (bs, out_dim) and ed16.shape == (bs,)
    assert jnp.allclose(out16, ref_out, atol=5e-2, rtol=5e-2)
    assert jnp.allclose(ed16, ref_ed, atol=1e-1, rtol=5e-2)

    print("KERNEL_OK")
</pallas_src>

<mosaic_0001>
module attributes {stable_mosaic.version = 11 : i64} {
  func.func @_noise_map_kernel(%arg0: i32, %arg1: memref<8x48xf32, #tpu.memory_space<vmem>>, %arg2: memref<48x128xf32, #tpu.memory_space<vmem>>, %arg3: memref<1x128xf32, #tpu.memory_space<vmem>>, %arg4: memref<128x128xf32, #tpu.memory_space<vmem>>, %arg5: memref<1x128xf32, #tpu.memory_space<vmem>>, %arg6: memref<128x128xf32, #tpu.memory_space<vmem>>, %arg7: memref<1x128xf32, #tpu.memory_space<vmem>>, %arg8: memref<8x128xf32, #tpu.memory_space<vmem>>) attributes {dimension_semantics = [#tpu.dimension_semantics<parallel>], iteration_bounds = array<i64: 1>, scalar_prefetch = 0 : i64, scratch_operands = 0 : i64, tpu.core_type = #tpu.core_type<tc>, window_params = [{transform_indices = @transform_0, window_bounds = array<i64: 8, 48>}, {pipeline_mode = #tpu.pipeline_mode<synchronous>, transform_indices = @transform_1, window_bounds = array<i64: 48, 128>}, {pipeline_mode = #tpu.pipeline_mode<synchronous>, transform_indices = @transform_2, window_bounds = array<i64: 1, 128>}, {pipeline_mode = #tpu.pipeline_mode<synchronous>, transform_indices = @transform_3, window_bounds = array<i64: 128, 128>}, {pipeline_mode = #tpu.pipeline_mode<synchronous>, transform_indices = @transform_4, window_bounds = array<i64: 1, 128>}, {pipeline_mode = #tpu.pipeline_mode<synchronous>, transform_indices = @transform_5, window_bounds = array<i64: 128, 128>}, {pipeline_mode = #tpu.pipeline_mode<synchronous>, transform_indices = @transform_6, window_bounds = array<i64: 1, 128>}, {transform_indices = @transform_7, window_bounds = array<i64: 8, 128>}]} {
    %c0 = arith.constant 0 : index
    %c0_0 = arith.constant 0 : index
    %0 = vector.load %arg1[%c0, %c0_0] : memref<8x48xf32, #tpu.memory_space<vmem>>, vector<8x48xf32>
    %c0_1 = arith.constant 0 : index
    %c0_2 = arith.constant 0 : index
    %1 = vector.load %arg2[%c0_1, %c0_2] : memref<48x128xf32, #tpu.memory_space<vmem>>, vector<48x128xf32>
    %cst = arith.constant dense<0.000000e+00> : vector<8x128xf32>
    %2 = tpu.matmul %0, %1, %cst {dimension_numbers = #tpu.dot_dimension_numbers<[1], [0], [0], [1], [0, 0, 1, 1], [], []>} : vector<8x48xf32>, vector<48x128xf32>, vector<8x128xf32> -> vector<8x128xf32>
    %c0_3 = arith.constant 0 : index
    %c0_4 = arith.constant 0 : index
    %3 = vector.load %arg3[%c0_3, %c0_4] : memref<1x128xf32, #tpu.memory_space<vmem>>, vector<1x128xf32>
    %4 = vector.broadcast %3 : vector<1x128xf32> to vector<8x128xf32>
    %5 = arith.addf %2, %4 : vector<8x128xf32>
    %cst_5 = arith.constant 0.000000e+00 : f32
    %6 = vector.broadcast %cst_5 : f32 to vector<8x128xf32>
    %7 = arith.maximumf %5, %6 : vector<8x128xf32>
    %c0_6 = arith.constant 0 : index
    %c0_7 = arith.constant 0 : index
    %8 = vector.load %arg4[%c0_6, %c0_7] : memref<128x128xf32, #tpu.memory_space<vmem>>, vector<128x128xf32>
    %cst_8 = arith.constant dense<0.000000e+00> : vector<8x128xf32>
    %9 = tpu.matmul %7, %8, %cst_8 {dimension_numbers = #tpu.dot_dimension_numbers<[1], [0], [0], [1], [0, 0, 1, 1], [], []>} : vector<8x128xf32>, vector<128x128xf32>, vector<8x128xf32> -> vector<8x128xf32>
    %c0_9 = arith.constant 0 : index
    %c0_10 = arith.constant 0 : index
    %10 = vector.load %arg5[%c0_9, %c0_10] : memref<1x128xf32, #tpu.memory_space<vmem>>, vector<1x128xf32>
    %11 = vector.broadcast %10 : vector<1x128xf32> to vector<8x128xf32>
    %12 = arith.addf %9, %11 : vector<8x128xf32>
    %cst_11 = arith.constant 0.000000e+00 : f32
    %13 = vector.broadcast %cst_11 : f32 to vector<8x128xf32>
    %14 = arith.maximumf %12, %13 : vector<8x128xf32>
    %c0_12 = arith.constant 0 : index
    %c0_13 = arith.constant 0 : index
    %15 = vector.load %arg6[%c0_12, %c0_13] : memref<128x128xf32, #tpu.memory_space<vmem>>, vector<128x128xf32>
    %cst_14 = arith.constant dense<0.000000e+00> : vector<8x128xf32>
    %16 = tpu.matmul %14, %15, %cst_14 {dimension_numbers = #tpu.dot_dimension_numbers<[1], [0], [0], [1], [0, 0, 1, 1], [], []>} : vector<8x128xf32>, vector<128x128xf32>, vector<8x128xf32> -> vector<8x128xf32>
    %c0_15 = arith.constant 0 : index
    %c0_16 = arith.constant 0 : index
    %17 = vector.load %arg7[%c0_15, %c0_16] : memref<1x128xf32, #tpu.memory_space<vmem>>, vector<1x128xf32>
    %18 = vector.broadcast %17 : vector<1x128xf32> to vector<8x128xf32>
    %19 = arith.addf %16, %18 : vector<8x128xf32>
    %20 = vector.extract_strided_slice %0 {offsets = [0, 32], sizes = [8, 16], strides = [1, 1]} : vector<8x48xf32> to vector<8x16xf32>
    %21 = vector.extract_strided_slice %19 {offsets = [0, 0], sizes = [8, 16], strides = [1, 1]} : vector<8x128xf32> to vector<8x16xf32>
    %22 = arith.subf %21, %20 : vector<8x16xf32>
    %23 = arith.mulf %22, %22 : vector<8x16xf32>
    %cst_17 = arith.constant dense<0.000000e+00> : vector<8xf32>
    %24 = vector.multi_reduction <add>, %23, %cst_17 [1] : vector<8x16xf32> to vector<8xf32>
    %25 = vector.shape_cast %24 : vector<8xf32> to vector<8x1xf32>
    %26 = math.sqrt %25 : vector<8x1xf32>
    %27 = tpu.iota {dimensions = array<i32: 1>} : vector<8x128xi32>
    %c16_i32 = arith.constant 16 : i32
    %28 = vector.broadcast %c16_i32 : i32 to vector<8x128xi32>
    %29 = arith.cmpi eq, %27, %28 : vector<8x128xi32>
    %30 = vector.shape_cast %26 : vector<8x1xf32> to vector<8x1xf32>
    %31 = vector.broadcast %30 : vector<8x1xf32> to vector<8x128xf32>
    %32 = arith.select %29, %31, %19 : vector<8x128xi1>, vector<8x128xf32>
    %c0_18 = arith.constant 0 : index
    %c0_19 = arith.constant 0 : index
    %33 = vector.load %arg8[%c0_18, %c0_19] : memref<8x128xf32, #tpu.memory_space<vmem>>, vector<8x128xf32>
    tpu.vector_store %arg8[%c0_18, %c0_19], %32 {strides = array<i32>} : memref<8x128xf32, #tpu.memory_space<vmem>>, vector<8x128xf32>,
    return
  }
  func.func @transform_0(%arg0: i32) -> (i32, i32) {
    %c0_i32 = arith.constant 0 : i32
    %c0_i32_0 = arith.constant 0 : i32
    return %arg0, %c0_i32 : i32, i32
  }
  func.func @transform_1(%arg0: i32) -> (i32, i32) {
    %c0_i32 = arith.constant 0 : i32
    %c0_i32_0 = arith.constant 0 : i32
    %c0_i32_1 = arith.constant 0 : i32
    return %c0_i32, %c0_i32_0 : i32, i32
  }
  func.func @transform_2(%arg0: i32) -> (i32, i32) {
    %c0_i32 = arith.constant 0 : i32
    %c0_i32_0 = arith.constant 0 : i32
    %c0_i32_1 = arith.constant 0 : i32
    return %c0_i32, %c0_i32_0 : i32, i32
  }
  func.func @transform_3(%arg0: i32) -> (i32, i32) {
    %c0_i32 = arith.constant 0 : i32
    %c0_i32_0 = arith.constant 0 : i32
    %c0_i32_1 = arith.constant 0 : i32
    return %c0_i32, %c0_i32_0 : i32, i32
  }
  func.func @transform_4(%arg0: i32) -> (i32, i32) {
    %c0_i32 = arith.constant 0 : i32
    %c0_i32_0 = arith.constant 0 : i32
    %c0_i32_1 = arith.constant 0 : i32
    return %c0_i32, %c0_i32_0 : i32, i32
  }
  func.func @transform_5(%arg0: i32) -> (i32, i32) {
    %c0_i32 = arith.constant 0 : i32
    %c0_i32_0 = arith.constant 0 : i32
    %c0_i32_1 = arith.constant 0 : i32
    return %c0_i32, %c0_i32_0 : i32, i32
  }
  func.func @transform_6(%arg0: i32) -> (i32, i32) {
    %c0_i32 = arith.constant 0 : i32
    %c0_i32_0 = arith.constant 0 : i32
    %c0_i32_1 = arith.constant 0 : i32
    return %c0_i32, %c0_i32_0 : i32, i32
  }
  func.func @transform_7(%arg0: i32) -> (i32, i32) {
    %c0_i32 = arith.constant 0 : i32
    %c0_i32_0 = arith.constant 0 : i32
    return %arg0, %c0_i32 : i32, i32
  }
}

module attributes {stable_mosaic.version = 11 : i64} {
  func.func @_noise_map_kernel(%arg0: i32, %arg1: memref<8x48xf32, #tpu.memory_space<vmem>>, %arg2: memref<48x128xf32, #tpu.memory_space<vmem>>, %arg3: memref<1x128xf32, #tpu.memory_space<vmem>>, %arg4: memref<128x128xf32, #tpu.memory_space<vmem>>, %arg5: memref<1x128xf32, #tpu.memory_space<vmem>>, %arg6: memref<128x128xf32, #tpu.memory_space<vmem>>, %arg7: memref<1x128xf32, #tpu.memory_space<vmem>>, %arg8: memref<8x128xf32, #tpu.memory_space<vmem>>) attributes {dimension_semantics = [#tpu.dimension_semantics<parallel>], iteration_bounds = array<i64: 1>, scalar_prefetch = 0 : i64, scratch_operands = 0 : i64, tpu.core_type = #tpu.core_type<tc>, window_params = [{transform_indices = @transform_0, window_bounds = array<i64: 8, 48>}, {pipeline_mode = #tpu.pipeline_mode<synchronous>, transform_indices = @transform_1, window_bounds = array<i64: 48, 128>}, {pipeline_mode = #tpu.pipeline_mode<synchronous>, transform_indices = @transform_2, window_bounds = array<i64: 1, 128>}, {pipeline_mode = #tpu.pipeline_mode<synchronous>, transform_indices = @transform_3, window_bounds = array<i64: 128, 128>}, {pipeline_mode = #tpu.pipeline_mode<synchronous>, transform_indices = @transform_4, window_bounds = array<i64: 1, 128>}, {pipeline_mode = #tpu.pipeline_mode<synchronous>, transform_indices = @transform_5, window_bounds = array<i64: 128, 128>}, {pipeline_mode = #tpu.pipeline_mode<synchronous>, transform_indices = @transform_6, window_bounds = array<i64: 1, 128>}, {transform_indices = @transform_7, window_bounds = array<i64: 8, 128>}]} {
    %c0 = arith.constant 0 : index
    %c0_0 = arith.constant 0 : index
    %0 = vector.load %arg1[%c0, %c0_0] : memref<8x48xf32, #tpu.memory_space<vmem>>, vector<8x48xf32>
    %c0_1 = arith.constant 0 : index
    %c0_2 = arith.constant 0 : index
    %1 = vector.load %arg2[%c0_1, %c0_2] : memref<48x128xf32, #tpu.memory_space<vmem>>, vector<48x128xf32>
    %cst = arith.constant dense<0.000000e+00> : vector<8x128xf32>
    %2 = tpu.matmul %0, %1, %cst {dimension_numbers = #tpu.dot_dimension_numbers<[1], [0], [0], [1], [0, 0, 1, 1], [], []>} : vector<8x48xf32>, vector<48x128xf32>, vector<8x128xf32> -> vector<8x128xf32>
    %c0_3 = arith.constant 0 : index
    %c0_4 = arith.constant 0 : index
    %3 = vector.load %arg3[%c0_3, %c0_4] : memref<1x128xf32, #tpu.memory_space<vmem>>, vector<1x128xf32>
    %4 = vector.broadcast %3 : vector<1x128xf32> to vector<8x128xf32>
    %5 = arith.addf %2, %4 : vector<8x128xf32>
    %cst_5 = arith.constant 0.000000e+00 : f32
    %6 = vector.broadcast %cst_5 : f32 to vector<8x128xf32>
    %7 = arith.maximumf %5, %6 : vector<8x128xf32>
    %c0_6 = arith.constant 0 : index
    %c0_7 = arith.constant 0 : index
    %8 = vector.load %arg4[%c0_6, %c0_7] : memref<128x128xf32, #tpu.memory_space<vmem>>, vector<128x128xf32>
    %cst_8 = arith.constant dense<0.000000e+00> : vector<8x128xf32>
    %9 = tpu.matmul %7, %8, %cst_8 {dimension_numbers = #tpu.dot_dimension_numbers<[1], [0], [0], [1], [0, 0, 1, 1], [], []>} : vector<8x128xf32>, vector<128x128xf32>, vector<8x128xf32> -> vector<8x128xf32>
    %c0_9 = arith.constant 0 : index
    %c0_10 = arith.constant 0 : index
    %10 = vector.load %arg5[%c0_9, %c0_10] : memref<1x128xf32, #tpu.memory_space<vmem>>, vector<1x128xf32>
    %11 = vector.broadcast %10 : vector<1x128xf32> to vector<8x128xf32>
    %12 = arith.addf %9, %11 : vector<8x128xf32>
    %cst_11 = arith.constant 0.000000e+00 : f32
    %13 = vector.broadcast %cst_11 : f32 to vector<8x128xf32>
    %14 = arith.maximumf %12, %13 : vector<8x128xf32>
    %c0_12 = arith.constant 0 : index
    %c0_13 = arith.constant 0 : index
    %15 = vector.load %arg6[%c0_12, %c0_13] : memref<128x128xf32, #tpu.memory_space<vmem>>, vector<128x128xf32>
    %cst_14 = arith.constant dense<0.000000e+00> : vector<8x128xf32>
    %16 = tpu.matmul %14, %15, %cst_14 {dimension_numbers = #tpu.dot_dimension_numbers<[1], [0], [0], [1], [0, 0, 1, 1], [], []>} : vector<8x128xf32>, vector<128x128xf32>, vector<8x128xf32> -> vector<8x128xf32>
    %c0_15 = arith.constant 0 : index
    %c0_16 = arith.constant 0 : index
    %17 = vector.load %arg7[%c0_15, %c0_16] : memref<1x128xf32, #tpu.memory_space<vmem>>, vector<1x128xf32>
    %18 = vector.broadcast %17 : vector<1x128xf32> to vector<8x128xf32>
    %19 = arith.addf %16, %18 : vector<8x128xf32>
    %20 = vector.extract_strided_slice %0 {offsets = [0, 32], sizes = [8, 16], strides = [1, 1]} : vector<8x48xf32> to vector<8x16xf32>
    %21 = vector.extract_strided_slice %19 {offsets = [0, 0], sizes = [8, 16], strides = [1, 1]} : vector<8x128xf32> to vector<8x16xf32>
    %22 = arith.subf %21, %20 : vector<8x16xf32>
    %23 = arith.mulf %22, %22 : vector<8x16xf32>
    %cst_17 = arith.constant dense<0.000000e+00> : vector<8xf32>
    %24 = vector.multi_reduction <add>, %23, %cst_17 [1] : vector<8x16xf32> to vector<8xf32>
    %25 = vector.shape_cast %24 : vector<8xf32> to vector<8x1xf32>
    %26 = math.sqrt %25 : vector<8x1xf32>
    %27 = tpu.iota {dimensions = array<i32: 1>} : vector<8x128xi32>
    %c16_i32 = arith.constant 16 : i32
    %28 = vector.broadcast %c16_i32 : i32 to vector<8x128xi32>
    %29 = arith.cmpi eq, %27, %28 : vector<8x128xi32>
    %30 = vector.shape_cast %26 : vector<8x1xf32> to vector<8x1xf32>
    %31 = vector.broadcast %30 : vector<8x1xf32> to vector<8x128xf32>
    %32 = arith.select %29, %31, %19 : vector<8x128xi1>, vector<8x128xf32>
    %c0_18 = arith.constant 0 : index
    %c0_19 = arith.constant 0 : index
    %33 = vector.load %arg8[%c0_18, %c0_19] : memref<8x128xf32, #tpu.memory_space<vmem>>, vector<8x128xf32>
    tpu.vector_store %arg8[%c0_18, %c0_19], %32 {strides = array<i32>} : memref<8x128xf32, #tpu.memory_space<vmem>>, vector<8x128xf32>,
    return
  }
  func.func @transform_0(%arg0: i32) -> (i32, i32) {
    %c0_i32 = arith.constant 0 : i32
    %c0_i32_0 = arith.constant 0 : i32
    return %arg0, %c0_i32 : i32, i32
  }
  func.func @transform_1(%arg0: i32) -> (i32, i32) {
    %c0_i32 = arith.constant 0 : i32
    %c0_i32_0 = arith.constant 0 : i32
    %c0_i32_1 = arith.constant 0 : i32
    return %c0_i32, %c0_i32_0 : i32, i32
  }
  func.func @transform_2(%arg0: i32) -> (i32, i32) {
    %c0_i32 = arith.constant 0 : i32
    %c0_i32_0 = arith.constant 0 : i32
    %c0_i32_1 = arith.constant 0 : i32
    return %c0_i32, %c0_i32_0 : i32, i32
  }
  func.func @transform_3(%arg0: i32) -> (i32, i32) {
    %c0_i32 = arith.constant 0 : i32
    %c0_i32_0 = arith.constant 0 : i32
    %c0_i32_1 = arith.constant 0 : i32
    return %c0_i32, %c0_i32_0 : i32, i32
  }
  func.func @transform_4(%arg0: i32) -> (i32, i32) {
    %c0_i32 = arith.constant 0 : i32
    %c0_i32_0 = arith.constant 0 : i32
    %c0_i32_1 = arith.constant 0 : i32
    return %c0_i32, %c0_i32_0 : i32, i32
  }
  func.func @transform_5(%arg0: i32) -> (i32, i32) {
    %c0_i32 = arith.constant 0 : i32
    %c0_i32_0 = arith.constant 0 : i32
    %c0_i32_1 = arith.constant 0 : i32
    return %c0_i32, %c0_i32_0 : i32, i32
  }
  func.func @transform_6(%arg0: i32) -> (i32, i32) {
    %c0_i32 = arith.constant 0 : i32
    %c0_i32_0 = arith.constant 0 : i32
    %c0_i32_1 = arith.constant 0 : i32
    return %c0_i32, %c0_i32_0 : i32, i32
  }
  func.func @transform_7(%arg0: i32) -> (i32, i32) {
    %c0_i32 = arith.constant 0 : i32
    %c0_i32_0 = arith.constant 0 : i32
    return %arg0, %c0_i32 : i32, i32
  }
}

</mosaic_0001>

<bundles_post_ra>
// kernel: tpu_custom_call.1
= control target key start
LH: loop header
LB: loop body
LE: loop exit
PB: predicated region body
PF: predicated region fallthrough
CT: control target
= control target key end

     0   :  { %12 = vsyncpa [#allocation3], 0  ;;  %s775_s0 = inlined_call_operand.hbm [shape: f32[8,48], index: 0, kind: input, shape index: {}]   ;;  %s776_s1 = inlined_call_operand.hbm [shape: f32[48,128], index: 1, kind: input, shape index: {}]   ;;  %s777_s2 = inlined_call_operand.vmem [shape: f32[1,128], index: 2, kind: input, shape index: {}]   ;;  %s778_s3 = inlined_call_operand.hbm [shape: f32[128,128], index: 3, kind: input, shape index: {}]   ;;  %s779_s4 = inlined_call_operand.vmem [shape: f32[1,128], index: 4, kind: input, shape index: {}]   ;;  %s780_s5 = inlined_call_operand.hbm [shape: f32[128,128], index: 5, kind: input, shape index: {}]   ;;  %s781_s6 = inlined_call_operand.vmem [shape: f32[1,128], index: 6, kind: input, shape index: {}]   ;;  %s782_s7 = inlined_call_operand.hbm [shape: f32[8,128], index: 7, kind: output, shape index: {}]  }
   0x1   :  { %13 = vsyncpa [#allocation6], 0 }
   0x2   :  { %14 = vsyncpa [#allocation9], 0 }
   0x3   :  { %15 = vsyncpa [#allocation4], 0  ;;  %s644_s24 = smov [#allocation5]  }
   0x4   :  { %s31_s25 = sshll.u32 %s644_s24, 4  ;;  %s32_s25 = int_to_ptr.vmem [resolvable:$true] %s31_s25 }
   0x5   :  { %s544_s26 = scalar_lea.vmem %s32_s25, 768  ;;  %p549_p1 = scmp.lt.s32.totalorder %s32_s25, %s32_s25 }
   0x6   :  { %p545_p0 = scmp.ne.s32.totalorder %s32_s25, %s544_s26  ;;  %p550_p2 = scmp.lt.s32.totalorder %s544_s26, %s544_s26 }
   0x8   :  { %p551_p3 = por %p550_p2, %p549_p1 }
   0xa   :  { %p552_p4 = pnand %p551_p3, %p545_p0 }
   0xc   :  { %555 = shalt.err (!%p552_p4)
}
   0xd   :  { %s645_s27 = smov 128   ;;  %s646_s28 = smov 8  }
   0xe   :  { %37 = dma.hbm_to_vmem [thread:$0]  %s776_s1, 768, %s32_s25, [#allocation6], %s645_s27, %s645_s27, %s646_s28  }
   0xf   :  { %s647_s8 = smov [#allocation2]   ;;  %s648_s10 = smov [#allocation7]  }
  0x10   :  { %s22_s9 = sshll.u32 %s647_s8, 4  ;;  %s45_s11 = sshll.u32 %s648_s10, 4  ;;  %s23_s9 = int_to_ptr.vmem [resolvable:$true] %s22_s9  ;;  %s46_s11 = int_to_ptr.vmem [resolvable:$true] %s45_s11 }
  0x11   :  { %s564_s12 = scalar_lea.vmem %s23_s9, 128  ;;  %p569_p6 = scmp.lt.s32.totalorder %s23_s9, %s23_s9 }
  0x12   :  { %p565_p5 = scmp.ne.s32.totalorder %s23_s9, %s564_s12  ;;  %p570_p7 = scmp.lt.s32.totalorder %s564_s12, %s564_s12 }
  0x14   :  { %p571_p8 = por %p570_p7, %p569_p6 }
  0x16   :  { %p572_p9 = pnand %p571_p8, %p565_p5 }
  0x18   :  { %575 = shalt.err (!%p572_p9)
}
  0x19   :  { %25 = dma.hbm_to_vmem [thread:$0]  %s775_s0, 128, %s23_s9, [#allocation3]  }
  0x1a   :  { %s584_s15 = scalar_lea.vmem %s46_s11, 2048  ;;  %p589_p11 = scmp.lt.s32.totalorder %s46_s11, %s46_s11 }
  0x1b   :  { %p585_p10 = scmp.ne.s32.totalorder %s46_s11, %s584_s15  ;;  %p590_p12 = scmp.lt.s32.totalorder %s584_s15, %s584_s15 }
  0x1d   :  { %p591_p13 = por %p590_p12, %p589_p11 }
  0x1f   :  { %p592_p0 = pnand %p591_p13, %p585_p10 }
  0x21   :  { %595 = shalt.err (!%p592_p0)
}
  0x22   :  { %51 = dma.hbm_to_vmem [thread:$0]  %s778_s3, 2048, %s46_s11, [#allocation6], %s645_s27, %s645_s27, %s646_s28  }
  0x23   :  { %s649_s17 = smov [#allocation8]  }
  0x24   :  { %s59_s18 = sshll.u32 %s649_s17, 4  ;;  %s60_s18 = int_to_ptr.vmem [resolvable:$true] %s59_s18 }
  0x25   :  { %s604_s19 = scalar_lea.vmem %s60_s18, 2048  ;;  %p609_p2 = scmp.lt.s32.totalorder %s60_s18, %s60_s18 }
  0x26   :  { %p605_p1 = scmp.ne.s32.totalorder %s60_s18, %s604_s19  ;;  %p610_p3 = scmp.lt.s32.totalorder %s604_s19, %s604_s19 }
  0x28   :  { %p611_p4 = por %p610_p3, %p609_p2 }
  0x2a   :  { %p612_p5 = pnand %p611_p4, %p605_p1 }
  0x2c   :  { %615 = shalt.err (!%p612_p5)
}
  0x2d   :  { %65 = dma.hbm_to_vmem [thread:$0]  %s780_s5, 2048, %s60_s18, [#allocation9], %s645_s27, %s645_s27, %s646_s28  }
  0x2e   :  { %636 = dma.done.wait [#allocation3], 128  }
  0x2f   :  { %637 = vsyncadd [#allocation3], 4294967168 }
  0x30   :  { %638 = dma.done.wait [#allocation6], 2816  }
  0x31   :  { %639 = vsyncadd [#allocation6], 4294964480 }
  0x32   :  { %640 = dma.done.wait [#allocation9], 2048  }
  0x33   :  { %641 = vsyncadd [#allocation9], 4294965248  ;;  %v650_v0 = vmov 0.0   ;;  %vm651_vm0 = vmmov 0   ;;  %v86_v1 = vld [vmem:[#allocation5 + $0x28] sm:$0xff]  ;;  %v85_v2 = vld [vmem:[#allocation5 + $0x20] sm:$0xff]  ;;  %v372_v59 = vlaneseq }
  0x34   :  { %439 = vmatprep.subr.mxu0 %v650_v0  ;;  %451 = vmatprep.mubr.msk.f32.mxu0 %vm651_vm0, %v650_v0  ;;  %v84_v3 = vld [vmem:[#allocation5 + $0x18] sm:$0xff]  ;;  %v184_v4 = vld [vmem:[#allocation7 + $0x78] sm:$0xff]  ;;  %v183_v5 = vld [vmem:[#allocation7 + $0x70] sm:$0xff]  ;;  %vm94_vm1 = vcmask 392192   ;;  %s652_s21 = smov 96   ;;  %vm361_vm2 = vcmask 130048  }
  0x35   :  { %454 = vmatprep.subr.mxu1 %v650_v0  ;;  %486 = vmatprep.mubr.msk.f32.mxu1 %vm651_vm0, %v650_v0  ;;  %v83_v6 = vld [vmem:[#allocation5 + $0x10] sm:$0xff]  ;;  %v182_v7 = vld [vmem:[#allocation7 + $0x68] sm:$0xff]  ;;  %v82_v8 = vld [vmem:[#allocation5 + $0x8] sm:$0xff]  ;;  %v373_v60 = vand.u32 127, %v372_v59 }
  0x36   :  { %440 = vmatpush3.msra.mxu0 %v86_v1  ;;  %455 = vmatpush3.msra.mxu1 %v184_v4  ;;  %v181_v9 = vld [vmem:[#allocation7 + $0x60] sm:$0xff]  ;;  %v81_v10 = vld [vmem:[#allocation5] sm:$0xff]  ;;  %v180_v11 = vld [vmem:[#allocation7 + $0x58] sm:$0xff] }
  0x37   :  { %441 = vmatprep.subr.mxu0 %v650_v0  ;;  %456 = vmatprep.subr.mxu1 %v650_v0  ;;  %v728_v12 = vld [vmem:[#allocation2] sm:$0xff]  ;;  %v179_v13 = vld [vmem:[#allocation7 + $0x50] sm:$0xff]  ;;  %v177_v15 = vld [vmem:[#allocation7 + $0x40] sm:$0xff]  ;;  %vm374_vm4 = vcmp.eq.s32.totalorder %v373_v60, 16 }
  0x38   :  { %442 = vmatpush3.msra.mxu0 %v85_v2  ;;  %457 = vmatpush3.msra.mxu1 %v183_v5  ;;  %v178_v14 = vld [vmem:[#allocation7 + $0x48] sm:$0xff]  ;;  %v176_v16 = vld [vmem:[#allocation7 + $0x38] sm:$0xff]  ;;  %v175_v17 = vld [vmem:[#allocation7 + $0x30] sm:$0xff] }
  0x39   :  { %443 = vmatprep.subr.mxu0 %v650_v0  ;;  %458 = vmatprep.subr.mxu1 %v650_v0  ;;  %v174_v18 = vld [vmem:[#allocation7 + $0x28] sm:$0xff]  ;;  %v173_v19 = vld [vmem:[#allocation7 + $0x20] sm:$0xff]  ;;  %v172_v20 = vld [vmem:[#allocation7 + $0x18] sm:$0xff] }
  0x3a   :  { %444 = vmatpush3.msra.mxu0 %v84_v3  ;;  %459 = vmatpush3.msra.mxu1 %v182_v7  ;;  %v171_v21 = vld [vmem:[#allocation7 + $0x10] sm:$0xff]  ;;  %v170_v22 = vld [vmem:[#allocation7 + $0x8] sm:$0xff]  ;;  %v169_v23 = vld [vmem:[#allocation7] sm:$0xff] }
  0x3b   :  { %445 = vmatprep.subr.mxu0 %v650_v0  ;;  %460 = vmatprep.subr.mxu1 %v650_v0  ;;  %v278_v24 = vld [vmem:[#allocation8 + $0x78] sm:$0xff]  ;;  %v277_v25 = vld [vmem:[#allocation8 + $0x70] sm:$0xff]  ;;  %v276_v26 = vld [vmem:[#allocation8 + $0x68] sm:$0xff] }
  0x3c   :  { %446 = vmatpush3.msra.mxu0 %v83_v6  ;;  %461 = vmatpush3.msra.mxu1 %v181_v9  ;;  %v275_v27 = vld [vmem:[#allocation8 + $0x60] sm:$0xff]  ;;  %v274_v28 = vld [vmem:[#allocation8 + $0x58] sm:$0xff]  ;;  %v273_v29 = vld [vmem:[#allocation8 + $0x50] sm:$0xff] }
  0x3d   :  { %447 = vmatprep.subr.mxu0 %v650_v0  ;;  %462 = vmatprep.subr.mxu1 %v650_v0  ;;  %v272_v30 = vld [vmem:[#allocation8 + $0x48] sm:$0xff]  ;;  %v271_v31 = vld [vmem:[#allocation8 + $0x40] sm:$0xff]  ;;  %v270_v32 = vld [vmem:[#allocation8 + $0x38] sm:$0xff] }
  0x3e   :  { %448 = vmatpush3.msra.mxu0 %v82_v8  ;;  %463 = vmatpush3.msra.mxu1 %v180_v11  ;;  %v269_v33 = vld [vmem:[#allocation8 + $0x30] sm:$0xff]  ;;  %v268_v34 = vld [vmem:[#allocation8 + $0x28] sm:$0xff]  ;;  %v267_v35 = vld [vmem:[#allocation8 + $0x20] sm:$0xff] }
  0x3f   :  { %449 = vmatprep.subr.mxu0 %v650_v0  ;;  %464 = vmatprep.subr.mxu1 %v650_v0  ;;  %v266_v36 = vld [vmem:[#allocation8 + $0x18] sm:$0xff]  ;;  %v394_v37 = vld [vmem:[%s777_s2] ss:$0 sm:$0xff]  ;;  %v265_v42 = vld [vmem:[#allocation8 + $0x10] sm:$0xff] }
  0x40   :  { %450 = vmatpush3.msra.mxu0 %v81_v10  ;;  %465 = vmatpush3.msra.mxu1 %v179_v13  ;;  %v264_v43 = vld [vmem:[#allocation8 + $0x8] sm:$0xff]  ;;  %v263_v44 = vld [vmem:[#allocation8] sm:$0xff] }
  0x41   :  { %452 = vmatmul.mubr.msk.f32.vlgmr.msra.gmra.mxu0 %vm94_vm1, %v728_v12  ;;  %489 = vmatprep.subr.mxu0 %v650_v0  ;;  %v396_v45 = vld [vmem:[%s779_s4] ss:$0 sm:$0xff]  ;;  %s653_s4 = smov [#allocation10]  }
  0x42   :  { %466 = vmatprep.subr.mxu1 %v650_v0  ;;  %521 = vmatprep.mubr.msk.f32.mxu0 %vm651_vm0, %v650_v0  ;;  %v397_v50 = vld [vmem:[%s781_s6] ss:$0 sm:$0xff]  ;;  %s383_s25 = sshll.u32 %s653_s4, 4  ;;  %s384_s25 = int_to_ptr.vmem [resolvable:$true] %s383_s25 }
  0x43   :  { %467 = vmatpush3.msra.mxu1 %v178_v14  ;;  %490 = vmatpush3.msra.mxu0 %v278_v24  ;;  %s616_s6 = scalar_lea.vmem %s384_s25, 128  ;;  %p621_p7 = scmp.lt.s32.totalorder %s384_s25, %s384_s25 }
  0x44   :  { %468 = vmatprep.subr.mxu1 %v650_v0  ;;  %491 = vmatprep.subr.mxu0 %v650_v0  ;;  %p617_p6 = scmp.ne.s32.totalorder %s384_s25, %s616_s6  ;;  %p622_p8 = scmp.lt.s32.totalorder %s616_s6, %s616_s6 }
  0x45   :  { %469 = vmatpush3.msra.mxu1 %v177_v15  ;;  %492 = vmatpush3.msra.mxu0 %v277_v25 }
  0x46   :  { %470 = vmatprep.subr.mxu1 %v650_v0  ;;  %493 = vmatprep.subr.mxu0 %v650_v0  ;;  %p623_p9 = por %p622_p8, %p621_p7 }
  0x47   :  { %471 = vmatpush3.msra.mxu1 %v176_v16  ;;  %494 = vmatpush3.msra.mxu0 %v276_v26 }
  0x48   :  { %472 = vmatprep.subr.mxu1 %v650_v0  ;;  %495 = vmatprep.subr.mxu0 %v650_v0  ;;  %p624_p10 = pnand %p623_p9, %p617_p6 }
  0x49   :  { %473 = vmatpush3.msra.mxu1 %v175_v17  ;;  %496 = vmatpush3.msra.mxu0 %v275_v27 }
  0x4a   :  { %474 = vmatprep.subr.mxu1 %v650_v0  ;;  %497 = vmatprep.subr.mxu0 %v650_v0 }
  0x4b   :  { %475 = vmatpush3.msra.mxu1 %v174_v18  ;;  %498 = vmatpush3.msra.mxu0 %v274_v28 }
  0x4c   :  { %476 = vmatprep.subr.mxu1 %v650_v0  ;;  %499 = vmatprep.subr.mxu0 %v650_v0 }
  0x4d   :  { %477 = vmatpush3.msra.mxu1 %v173_v19  ;;  %500 = vmatpush3.msra.mxu0 %v273_v29 }
  0x4e   :  { %478 = vmatprep.subr.mxu1 %v650_v0  ;;  %501 = vmatprep.subr.mxu0 %v650_v0 }
  0x4f   :  { %479 = vmatpush3.msra.mxu1 %v172_v20  ;;  %502 = vmatpush3.msra.mxu0 %v272_v30 }
  0x50   :  { %480 = vmatprep.subr.mxu1 %v650_v0  ;;  %503 = vmatprep.subr.mxu0 %v650_v0 }
  0x51   :  { %481 = vmatpush3.msra.mxu1 %v171_v21  ;;  %504 = vmatpush3.msra.mxu0 %v271_v31 }
  0x52   :  { %482 = vmatprep.subr.mxu1 %v650_v0  ;;  %505 = vmatprep.subr.mxu0 %v650_v0 }
  0x53   :  { %483 = vmatpush3.msra.mxu1 %v170_v22  ;;  %506 = vmatpush3.msra.mxu0 %v270_v32 }
  0x54   :  { %484 = vmatprep.subr.mxu1 %v650_v0  ;;  %507 = vmatprep.subr.mxu0 %v650_v0 }
  0x55   :  { %485 = vmatpush3.msra.mxu1 %v169_v23  ;;  %508 = vmatpush3.msra.mxu0 %v269_v33 }
  0x56   :  { %509 = vmatprep.subr.mxu0 %v650_v0  ;;  %356 = vrot.lane.b32.xlu0 %v728_v12, %s652_s21 }
  0x57   :  { %510 = vmatpush3.msra.mxu0 %v268_v34 }
  0x58   :  { %511 = vmatprep.subr.mxu0 %v650_v0 }
  0x59   :  { %512 = vmatpush3.msra.mxu0 %v267_v35 }
  0x5a   :  { %513 = vmatprep.subr.mxu0 %v650_v0 }
  0x5b   :  { %514 = vmatpush3.msra.mxu0 %v266_v36 }
  0x5c   :  { %515 = vmatprep.subr.mxu0 %v650_v0 }
  0x5d   :  { %516 = vmatpush3.msra.mxu0 %v265_v42 }
  0x5e   :  { %517 = vmatprep.subr.mxu0 %v650_v0 }
  0x5f   :  { %518 = vmatpush3.msra.mxu0 %v264_v43 }
  0x60   :  { %519 = vmatprep.subr.mxu0 %v650_v0 }
  0x61   :  { %520 = vmatpush3.msra.mxu0 %v263_v44 }
  0xc8   :  { %v357_v52 = vpop.permute.xlu0 %356 }
 0x101   :  { %v164_v38 = vpop.f32.mrf.mxu0 }
 0x102   :  { %v165_v39 = vadd.f32 %v394_v37, %v164_v38 }
 0x103   :  { %v453_v40 = vpop.f32.mrf.mxu0 }
 0x104   :  { %v168_v41 = vmax.f32 %v165_v39, 0.0 }
 0x106   :  { %487 = vmatmul.mubr.f32.vlgmr.msra.gmra.mxu1 %v168_v41 }
 0x1c6   :  { %v258_v46 = vpop.f32.mrf.mxu1 }
 0x1c7   :  { %v259_v47 = vadd.f32 %v396_v45, %v258_v46 }
 0x1c8   :  { %v488_v48 = vpop.f32.mrf.mxu1 }
 0x1c9   :  { %v262_v49 = vmax.f32 %v259_v47, 0.0 }
 0x1cb   :  { %522 = vmatmul.mubr.f32.vlgmr.msra.gmra.mxu0 %v262_v49 }
 0x28b   :  { %v352_v51 = vpop.f32.mrf.mxu0 }
 0x28c   :  { %v353_v53 = vadd.f32 %v397_v50, %v352_v51 }
 0x28d   :  { %v523_v54 = vpop.f32.mrf.mxu0 }
 0x28e   :  { %v359_v55 = vsub.f32 %v353_v53, %v357_v52 }
 0x290   :  { %v360_v56 = vmul.f32 %v359_v55, %v359_v55 }
 0x292   :  { %v362_v57 = vsel %vm361_vm2, %v360_v56, 0.0 }
 0x293   :  { %363 = vadd.xlane.f32.xlu0 %v362_v57 }
 0x31c   :  { %v364_v58 = vpop.xlane.xlu0 %363 }
 0x31d   :  { %534 = vrsqrt.f32 %v364_v58  ;;  %vm367_vm3 = vcmp.eq.f32.partialorder %v364_v58, inf  ;;  %v370_v63 = vand.u32 2147483648, %v364_v58  ;;  %vm369_vm5 = vcmp.eq.f32.partialorder %v364_v58, 0.0 }
 0x32a   :  { %v535_v61 = vpop.eup %534 }
 0x32b   :  { %v366_v62 = vmul.f32 %v535_v61, %v364_v58 }
 0x32d   :  { %v368_v0 = vsel %vm367_vm3, %v364_v58, %v366_v62 }
 0x32e   :  { %v371_v1 = vsel %vm369_vm5, %v370_v63, %v368_v0 }
 0x32f   :  { %v375_v2 = vsel %vm374_vm4, %v371_v1, %v353_v53 }
 0x330   :  { %376 = vst [vmem:[#allocation10] sm:$0xff] %v375_v2 }
 0x331   :  { %627 = shalt.err (!%p624_p10)
}
 0x332   :  { %386 = dma.vmem_to_hbm [thread:$0]  %s384_s25, 128, %s782_s7, [#allocation4]  }
 0x333   :  { %642 = dma.done.wait [#allocation4], 128  }
 0x334   :  { %643 = vsyncadd [#allocation4], 4294967168 }
 0x335   :  { %390 = vsyncpa [#allocation3], 1 }
 0x336   :  { %391 = vsyncpa [#allocation6], 1 }
 0x337   :  { %392 = vsyncpa [#allocation9], 1 }
 0x338   :  { %393 = vsyncpa [#allocation4], 1 }

// kernel: tpu_custom_call.1
= control target key start
LH: loop header
LB: loop body
LE: loop exit
PB: predicated region body
PF: predicated region fallthrough
CT: control target
= control target key end

     0   :  { %12 = vsyncpa [#allocation3], 0  ;;  %s775_s0 = inlined_call_operand.hbm [shape: f32[8,48], index: 0, kind: input, shape index: {}]   ;;  %s776_s1 = inlined_call_operand.hbm [shape: f32[48,128], index: 1, kind: input, shape index: {}]   ;;  %s777_s2 = inlined_call_operand.vmem [shape: f32[1,128], index: 2, kind: input, shape index: {}]   ;;  %s778_s3 = inlined_call_operand.hbm [shape: f32[128,128], index: 3, kind: input, shape index: {}]   ;;  %s779_s4 = inlined_call_operand.vmem [shape: f32[1,128], index: 4, kind: input, shape index: {}]   ;;  %s780_s5 = inlined_call_operand.hbm [shape: f32[128,128], index: 5, kind: input, shape index: {}]   ;;  %s781_s6 = inlined_call_operand.vmem [shape: f32[1,128], index: 6, kind: input, shape index: {}]   ;;  %s782_s7 = inlined_call_operand.hbm [shape: f32[8,128], index: 7, kind: output, shape index: {}]  }
   0x1   :  { %13 = vsyncpa [#allocation6], 0 }
   0x2   :  { %14 = vsyncpa [#allocation9], 0 }
   0x3   :  { %15 = vsyncpa [#allocation4], 0  ;;  %s644_s24 = smov [#allocation5]  }
   0x4   :  { %s31_s25 = sshll.u32 %s644_s24, 4  ;;  %s32_s25 = int_to_ptr.vmem [resolvable:$true] %s31_s25 }
   0x5   :  { %s544_s26 = scalar_lea.vmem %s32_s25, 768  ;;  %p549_p1 = scmp.lt.s32.totalorder %s32_s25, %s32_s25 }
   0x6   :  { %p545_p0 = scmp.ne.s32.totalorder %s32_s25, %s544_s26  ;;  %p550_p2 = scmp.lt.s32.totalorder %s544_s26, %s544_s26 }
   0x8   :  { %p551_p3 = por %p550_p2, %p549_p1 }
   0xa   :  { %p552_p4 = pnand %p551_p3, %p545_p0 }
   0xc   :  { %555 = shalt.err (!%p552_p4)
}
   0xd   :  { %s645_s27 = smov 128   ;;  %s646_s28 = smov 8  }
   0xe   :  { %37 = dma.hbm_to_vmem [thread:$0]  %s776_s1, 768, %s32_s25, [#allocation6], %s645_s27, %s645_s27, %s646_s28  }
   0xf   :  { %s647_s8 = smov [#allocation2]   ;;  %s648_s10 = smov [#allocation7]  }
  0x10   :  { %s22_s9 = sshll.u32 %s647_s8, 4  ;;  %s45_s11 = sshll.u32 %s648_s10, 4  ;;  %s23_s9 = int_to_ptr.vmem [resolvable:$true] %s22_s9  ;;  %s46_s11 = int_to_ptr.vmem [resolvable:$true] %s45_s11 }
  0x11   :  { %s564_s12 = scalar_lea.vmem %s23_s9, 128  ;;  %p569_p6 = scmp.lt.s32.totalorder %s23_s9, %s23_s9 }
  0x12   :  { %p565_p5 = scmp.ne.s32.totalorder %s23_s9, %s564_s12  ;;  %p570_p7 = scmp.lt.s32.totalorder %s564_s12, %s564_s12 }
  0x14   :  { %p571_p8 = por %p570_p7, %p569_p6 }
  0x16   :  { %p572_p9 = pnand %p571_p8, %p565_p5 }
  0x18   :  { %575 = shalt.err (!%p572_p9)
}
  0x19   :  { %25 = dma.hbm_to_vmem [thread:$0]  %s775_s0, 128, %s23_s9, [#allocation3]  }
  0x1a   :  { %s584_s15 = scalar_lea.vmem %s46_s11, 2048  ;;  %p589_p11 = scmp.lt.s32.totalorder %s46_s11, %s46_s11 }
  0x1b   :  { %p585_p10 = scmp.ne.s32.totalorder %s46_s11, %s584_s15  ;;  %p590_p12 = scmp.lt.s32.totalorder %s584_s15, %s584_s15 }
  0x1d   :  { %p591_p13 = por %p590_p12, %p589_p11 }
  0x1f   :  { %p592_p0 = pnand %p591_p13, %p585_p10 }
  0x21   :  { %595 = shalt.err (!%p592_p0)
}
  0x22   :  { %51 = dma.hbm_to_vmem [thread:$0]  %s778_s3, 2048, %s46_s11, [#allocation6], %s645_s27, %s645_s27, %s646_s28  }
  0x23   :  { %s649_s17 = smov [#allocation8]  }
  0x24   :  { %s59_s18 = sshll.u32 %s649_s17, 4  ;;  %s60_s18 = int_to_ptr.vmem [resolvable:$true] %s59_s18 }
  0x25   :  { %s604_s19 = scalar_lea.vmem %s60_s18, 2048  ;;  %p609_p2 = scmp.lt.s32.totalorder %s60_s18, %s60_s18 }
  0x26   :  { %p605_p1 = scmp.ne.s32.totalorder %s60_s18, %s604_s19  ;;  %p610_p3 = scmp.lt.s32.totalorder %s604_s19, %s604_s19 }
  0x28   :  { %p611_p4 = por %p610_p3, %p609_p2 }
  0x2a   :  { %p612_p5 = pnand %p611_p4, %p605_p1 }
  0x2c   :  { %615 = shalt.err (!%p612_p5)
}
  0x2d   :  { %65 = dma.hbm_to_vmem [thread:$0]  %s780_s5, 2048, %s60_s18, [#allocation9], %s645_s27, %s645_s27, %s646_s28  }
  0x2e   :  { %636 = dma.done.wait [#allocation3], 128  }
  0x2f   :  { %637 = vsyncadd [#allocation3], 4294967168 }
  0x30   :  { %638 = dma.done.wait [#allocation6], 2816  }
  0x31   :  { %639 = vsyncadd [#allocation6], 4294964480 }
  0x32   :  { %640 = dma.done.wait [#allocation9], 2048  }
  0x33   :  { %641 = vsyncadd [#allocation9], 4294965248  ;;  %v650_v0 = vmov 0.0   ;;  %vm651_vm0 = vmmov 0   ;;  %v86_v1 = vld [vmem:[#allocation5 + $0x28] sm:$0xff]  ;;  %v85_v2 = vld [vmem:[#allocation5 + $0x20] sm:$0xff]  ;;  %v372_v59 = vlaneseq }
  0x34   :  { %439 = vmatprep.subr.mxu0 %v650_v0  ;;  %451 = vmatprep.mubr.msk.f32.mxu0 %vm651_vm0, %v650_v0  ;;  %v84_v3 = vld [vmem:[#allocation5 + $0x18] sm:$0xff]  ;;  %v184_v4 = vld [vmem:[#allocation7 + $0x78] sm:$0xff]  ;;  %v183_v5 = vld [vmem:[#allocation7 + $0x70] sm:$0xff]  ;;  %vm94_vm1 = vcmask 392192   ;;  %s652_s21 = smov 96   ;;  %vm361_vm2 = vcmask 130048  }
  0x35   :  { %454 = vmatprep.subr.mxu1 %v650_v0  ;;  %486 = vmatprep.mubr.msk.f32.mxu1 %vm651_vm0, %v650_v0  ;;  %v83_v6 = vld [vmem:[#allocation5 + $0x10] sm:$0xff]  ;;  %v182_v7 = vld [vmem:[#allocation7 + $0x68] sm:$0xff]  ;;  %v82_v8 = vld [vmem:[#allocation5 + $0x8] sm:$0xff]  ;;  %v373_v60 = vand.u32 127, %v372_v59 }
  0x36   :  { %440 = vmatpush3.msra.mxu0 %v86_v1  ;;  %455 = vmatpush3.msra.mxu1 %v184_v4  ;;  %v181_v9 = vld [vmem:[#allocation7 + $0x60] sm:$0xff]  ;;  %v81_v10 = vld [vmem:[#allocation5] sm:$0xff]  ;;  %v180_v11 = vld [vmem:[#allocation7 + $0x58] sm:$0xff] }
  0x37   :  { %441 = vmatprep.subr.mxu0 %v650_v0  ;;  %456 = vmatprep.subr.mxu1 %v650_v0  ;;  %v728_v12 = vld [vmem:[#allocation2] sm:$0xff]  ;;  %v179_v13 = vld [vmem:[#allocation7 + $0x50] sm:$0xff]  ;;  %v177_v15 = vld [vmem:[#allocation7 + $0x40] sm:$0xff]  ;;  %vm374_vm4 = vcmp.eq.s32.totalorder %v373_v60, 16 }
  0x38   :  { %442 = vmatpush3.msra.mxu0 %v85_v2  ;;  %457 = vmatpush3.msra.mxu1 %v183_v5  ;;  %v178_v14 = vld [vmem:[#allocation7 + $0x48] sm:$0xff]  ;;  %v176_v16 = vld [vmem:[#allocation7 + $0x38] sm:$0xff]  ;;  %v175_v17 = vld [vmem:[#allocation7 + $0x30] sm:$0xff] }
  0x39   :  { %443 = vmatprep.subr.mxu0 %v650_v0  ;;  %458 = vmatprep.subr.mxu1 %v650_v0  ;;  %v174_v18 = vld [vmem:[#allocation7 + $0x28] sm:$0xff]  ;;  %v173_v19 = vld [vmem:[#allocation7 + $0x20] sm:$0xff]  ;;  %v172_v20 = vld [vmem:[#allocation7 + $0x18] sm:$0xff] }
  0x3a   :  { %444 = vmatpush3.msra.mxu0 %v84_v3  ;;  %459 = vmatpush3.msra.mxu1 %v182_v7  ;;  %v171_v21 = vld [vmem:[#allocation7 + $0x10] sm:$0xff]  ;;  %v170_v22 = vld [vmem:[#allocation7 + $0x8] sm:$0xff]  ;;  %v169_v23 = vld [vmem:[#allocation7] sm:$0xff] }
  0x3b   :  { %445 = vmatprep.subr.mxu0 %v650_v0  ;;  %460 = vmatprep.subr.mxu1 %v650_v0  ;;  %v278_v24 = vld [vmem:[#allocation8 + $0x78] sm:$0xff]  ;;  %v277_v25 = vld [vmem:[#allocation8 + $0x70] sm:$0xff]  ;;  %v276_v26 = vld [vmem:[#allocation8 + $0x68] sm:$0xff] }
  0x3c   :  { %446 = vmatpush3.msra.mxu0 %v83_v6  ;;  %461 = vmatpush3.msra.mxu1 %v181_v9  ;;  %v275_v27 = vld [vmem:[#allocation8 + $0x60] sm:$0xff]  ;;  %v274_v28 = vld [vmem:[#allocation8 + $0x58] sm:$0xff]  ;;  %v273_v29 = vld [vmem:[#allocation8 + $0x50] sm:$0xff] }
  0x3d   :  { %447 = vmatprep.subr.mxu0 %v650_v0  ;;  %462 = vmatprep.subr.mxu1 %v650_v0  ;;  %v272_v30 = vld [vmem:[#allocation8 + $0x48] sm:$0xff]  ;;  %v271_v31 = vld [vmem:[#allocation8 + $0x40] sm:$0xff]  ;;  %v270_v32 = vld [vmem:[#allocation8 + $0x38] sm:$0xff] }
  0x3e   :  { %448 = vmatpush3.msra.mxu0 %v82_v8  ;;  %463 = vmatpush3.msra.mxu1 %v180_v11  ;;  %v269_v33 = vld [vmem:[#allocation8 + $0x30] sm:$0xff]  ;;  %v268_v34 = vld [vmem:[#allocation8 + $0x28] sm:$0xff]  ;;  %v267_v35 = vld [vmem:[#allocation8 + $0x20] sm:$0xff] }
  0x3f   :  { %449 = vmatprep.subr.mxu0 %v650_v0  ;;  %464 = vmatprep.subr.mxu1 %v650_v0  ;;  %v266_v36 = vld [vmem:[#allocation8 + $0x18] sm:$0xff]  ;;  %v394_v37 = vld [vmem:[%s777_s2] ss:$0 sm:$0xff]  ;;  %v265_v42 = vld [vmem:[#allocation8 + $0x10] sm:$0xff] }
  0x40   :  { %450 = vmatpush3.msra.mxu0 %v81_v10  ;;  %465 = vmatpush3.msra.mxu1 %v179_v13  ;;  %v264_v43 = vld [vmem:[#allocation8 + $0x8] sm:$0xff]  ;;  %v263_v44 = vld [vmem:[#allocation8] sm:$0xff] }
  0x41   :  { %452 = vmatmul.mubr.msk.f32.vlgmr.msra.gmra.mxu0 %vm94_vm1, %v728_v12  ;;  %489 = vmatprep.subr.mxu0 %v650_v0  ;;  %v396_v45 = vld [vmem:[%s779_s4] ss:$0 sm:$0xff]  ;;  %s653_s4 = smov [#allocation10]  }
  0x42   :  { %466 = vmatprep.subr.mxu1 %v650_v0  ;;  %521 = vmatprep.mubr.msk.f32.mxu0 %vm651_vm0, %v650_v0  ;;  %v397_v50 = vld [vmem:[%s781_s6] ss:$0 sm:$0xff]  ;;  %s383_s25 = sshll.u32 %s653_s4, 4  ;;  %s384_s25 = int_to_ptr.vmem [resolvable:$true] %s383_s25 }
  0x43   :  { %467 = vmatpush3.msra.mxu1 %v178_v14  ;;  %490 = vmatpush3.msra.mxu0 %v278_v24  ;;  %s616_s6 = scalar_lea.vmem %s384_s25, 128  ;;  %p621_p7 = scmp.lt.s32.totalorder %s384_s25, %s384_s25 }
  0x44   :  { %468 = vmatprep.subr.mxu1 %v650_v0  ;;  %491 = vmatprep.subr.mxu0 %v650_v0  ;;  %p617_p6 = scmp.ne.s32.totalorder %s384_s25, %s616_s6  ;;  %p622_p8 = scmp.lt.s32.totalorder %s616_s6, %s616_s6 }
  0x45   :  { %469 = vmatpush3.msra.mxu1 %v177_v15  ;;  %492 = vmatpush3.msra.mxu0 %v277_v25 }
  0x46   :  { %470 = vmatprep.subr.mxu1 %v650_v0  ;;  %493 = vmatprep.subr.mxu0 %v650_v0  ;;  %p623_p9 = por %p622_p8, %p621_p7 }
  0x47   :  { %471 = vmatpush3.msra.mxu1 %v176_v16  ;;  %494 = vmatpush3.msra.mxu0 %v276_v26 }
  0x48   :  { %472 = vmatprep.subr.mxu1 %v650_v0  ;;  %495 = vmatprep.subr.mxu0 %v650_v0  ;;  %p624_p10 = pnand %p623_p9, %p617_p6 }
  0x49   :  { %473 = vmatpush3.msra.mxu1 %v175_v17  ;;  %496 = vmatpush3.msra.mxu0 %v275_v27 }
  0x4a   :  { %474 = vmatprep.subr.mxu1 %v650_v0  ;;  %497 = vmatprep.subr.mxu0 %v650_v0 }
  0x4b   :  { %475 = vmatpush3.msra.mxu1 %v174_v18  ;;  %498 = vmatpush3.msra.mxu0 %v274_v28 }
  0x4c   :  { %476 = vmatprep.subr.mxu1 %v650_v0  ;;  %499 = vmatprep.subr.mxu0 %v650_v0 }
  0x4d   :  { %477 = vmatpush3.msra.mxu1 %v173_v19  ;;  %500 = vmatpush3.msra.mxu0 %v273_v29 }
  0x4e   :  { %478 = vmatprep.subr.mxu1 %v650_v0  ;;  %501 = vmatprep.subr.mxu0 %v650_v0 }
  0x4f   :  { %479 = vmatpush3.msra.mxu1 %v172_v20  ;;  %502 = vmatpush3.msra.mxu0 %v272_v30 }
  0x50   :  { %480 = vmatprep.subr.mxu1 %v650_v0  ;;  %503 = vmatprep.subr.mxu0 %v650_v0 }
  0x51   :  { %481 = vmatpush3.msra.mxu1 %v171_v21  ;;  %504 = vmatpush3.msra.mxu0 %v271_v31 }
  0x52   :  { %482 = vmatprep.subr.mxu1 %v650_v0  ;;  %505 = vmatprep.subr.mxu0 %v650_v0 }
  0x53   :  { %483 = vmatpush3.msra.mxu1 %v170_v22  ;;  %506 = vmatpush3.msra.mxu0 %v270_v32 }
  0x54   :  { %484 = vmatprep.subr.mxu1 %v650_v0  ;;  %507 = vmatprep.subr.mxu0 %v650_v0 }
  0x55   :  { %485 = vmatpush3.msra.mxu1 %v169_v23  ;;  %508 = vmatpush3.msra.mxu0 %v269_v33 }
  0x56   :  { %509 = vmatprep.subr.mxu0 %v650_v0  ;;  %356 = vrot.lane.b32.xlu0 %v728_v12, %s652_s21 }
  0x57   :  { %510 = vmatpush3.msra.mxu0 %v268_v34 }
  0x58   :  { %511 = vmatprep.subr.mxu0 %v650_v0 }
  0x59   :  { %512 = vmatpush3.msra.mxu0 %v267_v35 }
  0x5a   :  { %513 = vmatprep.subr.mxu0 %v650_v0 }
  0x5b   :  { %514 = vmatpush3.msra.mxu0 %v266_v36 }
  0x5c   :  { %515 = vmatprep.subr.mxu0 %v650_v0 }
  0x5d   :  { %516 = vmatpush3.msra.mxu0 %v265_v42 }
  0x5e   :  { %517 = vmatprep.subr.mxu0 %v650_v0 }
  0x5f   :  { %518 = vmatpush3.msra.mxu0 %v264_v43 }
  0x60   :  { %519 = vmatprep.subr.mxu0 %v650_v0 }
  0x61   :  { %520 = vmatpush3.msra.mxu0 %v263_v44 }
  0xc8   :  { %v357_v52 = vpop.permute.xlu0 %356 }
 0x101   :  { %v164_v38 = vpop.f32.mrf.mxu0 }
 0x102   :  { %v165_v39 = vadd.f32 %v394_v37, %v164_v38 }
 0x103   :  { %v453_v40 = vpop.f32.mrf.mxu0 }
 0x104   :  { %v168_v41 = vmax.f32 %v165_v39, 0.0 }
 0x106   :  { %487 = vmatmul.mubr.f32.vlgmr.msra.gmra.mxu1 %v168_v41 }
 0x1c6   :  { %v258_v46 = vpop.f32.mrf.mxu1 }
 0x1c7   :  { %v259_v47 = vadd.f32 %v396_v45, %v258_v46 }
 0x1c8   :  { %v488_v48 = vpop.f32.mrf.mxu1 }
 0x1c9   :  { %v262_v49 = vmax.f32 %v259_v47, 0.0 }
 0x1cb   :  { %522 = vmatmul.mubr.f32.vlgmr.msra.gmra.mxu0 %v262_v49 }
 0x28b   :  { %v352_v51 = vpop.f32.mrf.mxu0 }
 0x28c   :  { %v353_v53 = vadd.f32 %v397_v50, %v352_v51 }
 0x28d   :  { %v523_v54 = vpop.f32.mrf.mxu0 }
 0x28e   :  { %v359_v55 = vsub.f32 %v353_v53, %v357_v52 }
 0x290   :  { %v360_v56 = vmul.f32 %v359_v55, %v359_v55 }
 0x292   :  { %v362_v57 = vsel %vm361_vm2, %v360_v56, 0.0 }
 0x293   :  { %363 = vadd.xlane.f32.xlu0 %v362_v57 }
 0x31c   :  { %v364_v58 = vpop.xlane.xlu0 %363 }
 0x31d   :  { %534 = vrsqrt.f32 %v364_v58  ;;  %vm367_vm3 = vcmp.eq.f32.partialorder %v364_v58, inf  ;;  %v370_v63 = vand.u32 2147483648, %v364_v58  ;;  %vm369_vm5 = vcmp.eq.f32.partialorder %v364_v58, 0.0 }
 0x32a   :  { %v535_v61 = vpop.eup %534 }
 0x32b   :  { %v366_v62 = vmul.f32 %v535_v61, %v364_v58 }
 0x32d   :  { %v368_v0 = vsel %vm367_vm3, %v364_v58, %v366_v62 }
 0x32e   :  { %v371_v1 = vsel %vm369_vm5, %v370_v63, %v368_v0 }
 0x32f   :  { %v375_v2 = vsel %vm374_vm4, %v371_v1, %v353_v53 }
 0x330   :  { %376 = vst [vmem:[#allocation10] sm:$0xff] %v375_v2 }
 0x331   :  { %627 = shalt.err (!%p624_p10)
}
 0x332   :  { %386 = dma.vmem_to_hbm [thread:$0]  %s384_s25, 128, %s782_s7, [#allocation4]  }
 0x333   :  { %642 = dma.done.wait [#allocation4], 128  }
 0x334   :  { %643 = vsyncadd [#allocation4], 4294967168 }
 0x335   :  { %390 = vsyncpa [#allocation3], 1 }
 0x336   :  { %391 = vsyncpa [#allocation6], 1 }
 0x337   :  { %392 = vsyncpa [#allocation9], 1 }
 0x338   :  { %393 = vsyncpa [#allocation4], 1 }

</bundles_post_ra>
